<compile_context>
chip_gen: v7x
topology: tpu7x:2x2x1
jax: 0.10.0
libtpu: 0.0.40
codegen_flags: <defaults>
</compile_context>

<pallas_src>
import functools

import jax
import jax.numpy as jnp
from jax.experimental import pallas as pl
from jax.experimental.pallas import tpu as pltpu

LANE = 128          # vreg lane width
SUBLANE_BF16 = 16   # bf16 packs two rows per sublane -> keep row tiles multiples of 16


def _round_up(n, m):
    return ((n + m - 1) // m) * m


def mlp_kernel(x_ref, w1_ref, b1_ref, w2_ref, b2_ref, o_ref):
    # Layer 1 on the MXU: bf16 operands, f32 accumulation.
    h = jnp.dot(x_ref[...], w1_ref[...], preferred_element_type=jnp.float32)
    # Bias + ReLU in f32 on the VPU (v5e-friendly; negligible cost at these widths).
    h = jnp.maximum(h + b1_ref[...], 0.0)
    # Layer 2 (raw logits, no softmax — matches the PyTorch forward).
    out = jnp.dot(h.astype(w2_ref.dtype), w2_ref[...],
                  preferred_element_type=jnp.float32)
    o_ref[...] = (out + b2_ref[...]).astype(o_ref.dtype)


def prepare_params(w1, b1, w2, b2):
    """One-time padding + bf16 casts of the parameters (hoisted out of the per-call
    path). w1: [In, H], b1: [H], w2: [H, C], b2: [C]."""
    In, H = w1.shape
    C = w2.shape[1]
    Inp = _round_up(In, LANE)
    Hp = _round_up(H, LANE)
    Cp = _round_up(C, LANE)
    # Zero padding is exact: zero weight rows/cols + zero bias contribute 0 through
    # bias + ReLU, so padded logits columns are discarded without error.
    w1p = jnp.zeros((Inp, Hp), jnp.float32).at[:In, :H].set(
        w1.astype(jnp.float32)).astype(jnp.bfloat16)
    w2p = jnp.zeros((Hp, Cp), jnp.float32).at[:H, :C].set(
        w2.astype(jnp.float32)).astype(jnp.bfloat16)
    # Biases stay f32, 2-D so they map onto (sublane, lane) tiles.
    b1p = jnp.zeros((1, Hp), jnp.float32).at[0, :H].set(b1.astype(jnp.float32))
    b2p = jnp.zeros((1, Cp), jnp.float32).at[0, :C].set(b2.astype(jnp.float32))
    return w1p, b1p, w2p, b2p


@functools.partial(jax.jit, static_argnames=("num_classes", "tb"))
def neural_net2_forward(x, w1p, b1p, w2p, b2p, *, num_classes, tb=1024):
    """x: [B, In] -> logits [B, num_classes]. Params come from prepare_params()."""
    B, In = x.shape
    Inp, Hp = w1p.shape
    Cp = w2p.shape[1]
    C = num_classes
    out_dtype = x.dtype

    # Batch tile: sized by VMEM (1024 rows fits every generation at these widths),
    # multiple of 16 rows for bf16 sublane packing; pad B to a whole number of tiles.
    TB = min(tb, _round_up(B, SUBLANE_BF16))
    Bp = _round_up(B, TB)
    n_tiles = Bp // TB

    # Pad + cast the activation (fuses with the pallas_call under jit).
    xp = jnp.zeros((Bp, Inp), jnp.bfloat16).at[:B, :In].set(x.astype(jnp.bfloat16))

    # VMEM budget from actual bytes: single-buffered residents + double-buffered
    # moving x/out tiles, plus headroom. Clamped so it stays sane on v5e (16 MiB
    # default scoped) and doesn't over-reserve on v7x (64 MiB physical).
    resident_bytes = (Inp * Hp + Hp * Cp) * 2 + (Hp + Cp) * 4
    moving_bytes = 2 * TB * (Inp + Cp) * 2          # bf16 x tile + bf16 out tile, x2 buffers
    vmem_bytes = int(1.5 * (resident_bytes + moving_bytes)) + (2 << 20)
    vmem_bytes = max(4 << 20, min(vmem_bytes, 32 << 20))

    # Constant-index blocks (weights/biases) only need a single VMEM buffer.
    resident = dict(pipeline_mode=pl.Buffered(1))

    # TODO(synk): once In*Hp or Hp*Cp in bf16 approaches ~8-16 MiB, add an innermost
    # "arbitrary" contraction grid axis with an f32 VMEM accumulator instead of
    # keeping both weights fully resident (matters first on v7x's 64 MiB VMEM).
    out_padded = pl.pallas_call(
        mlp_kernel,
        # bf16 logits: halves the dominant HBM write stream (Cp is 8x-padded for C=16).
        out_shape=jax.ShapeDtypeStruct((Bp, Cp), jnp.bfloat16),
        grid_spec=pl.GridSpec(
            grid=(n_tiles,),
            in_specs=[
                # Batch-tiled activation block (moves with the grid index).
                pl.BlockSpec((TB, Inp), lambda i: (i, 0)),
                # Weights / biases: constant index_map -> resident, single-buffered.
                pl.BlockSpec((Inp, Hp), lambda i: (0, 0), **resident),
                pl.BlockSpec((1, Hp), lambda i: (0, 0), **resident),
                pl.BlockSpec((Hp, Cp), lambda i: (0, 0), **resident),
                pl.BlockSpec((1, Cp), lambda i: (0, 0), **resident),
            ],
            out_specs=pl.BlockSpec((TB, Cp), lambda i: (i, 0)),
        ),
        compiler_params=pltpu.CompilerParams(
            # Pure batch parallelism, no reduction axis. On v7x the batch tiles can
            # shard across the two TensorCores whenever n_tiles >= 2.
            dimension_semantics=("parallel",),
            vmem_limit_bytes=vmem_bytes,
        ),
    )(xp, w1p, b1p, w2p, b2p)

    # Strip batch / lane padding and restore caller dtype (slice + cast fuse under jit).
    return out_padded[:B, :C].astype(out_dtype)


def reference_forward(x, w1, b1, w2, b2):
    h = jnp.maximum(x @ w1 + b1, 0.0)
    return h @ w2 + b2


if __name__ == "__main__":
    # Small shapes consistent with the module's forward:
    # input_size=32, hidden_size=64, num_classes=16, batch=8.
    B, In, H, C = 8, 32, 64, 16

    key = jax.random.PRNGKey(0)
    kx, k1, kb1, k2, kb2 = jax.random.split(key, 5)

    x = jax.random.normal(kx, (B, In), dtype=jnp.float32)
    # Deterministic parameter init (PyTorch-style uniform bounds, synthetic).
    bound1 = 1.0 / float(In) ** 0.5
    bound2 = 1.0 / float(H) ** 0.5
    w1 = jax.random.uniform(k1, (In, H), jnp.float32, minval=-bound1, maxval=bound1)
    b1 = jax.random.uniform(kb1, (H,), jnp.float32, minval=-bound1, maxval=bound1)
    w2 = jax.random.uniform(k2, (H, C), jnp.float32, minval=-bound2, maxval=bound2)
    b2 = jax.random.uniform(kb2, (C,), jnp.float32, minval=-bound2, maxval=bound2)

    # One-time parameter preparation (padding + bf16 cast hoisted out of the forward).
    w1p, b1p, w2p, b2p = prepare_params(w1, b1, w2, b2)

    out = neural_net2_forward(x, w1p, b1p, w2p, b2p, num_classes=C)
    jax.block_until_ready(out)

    ref = reference_forward(x, w1, b1, w2, b2)
    assert out.shape == (B, C)
    # bf16 MXU operands / bf16 logits with f32 accumulation -> loosened tolerance.
    assert jnp.allclose(out, ref, atol=5e-2, rtol=5e-2), "mismatch vs. reference"

    print("KERNEL_OK")
</pallas_src>

<mosaic_0001>
module attributes {stable_mosaic.version = 11 : i64} {
  func.func @mlp_kernel(%arg0: i32, %arg1: memref<16x128xbf16, #tpu.memory_space<vmem>>, %arg2: memref<128x128xbf16, #tpu.memory_space<vmem>>, %arg3: memref<1x128xf32, #tpu.memory_space<vmem>>, %arg4: memref<128x128xbf16, #tpu.memory_space<vmem>>, %arg5: memref<1x128xf32, #tpu.memory_space<vmem>>, %arg6: memref<16x128xbf16, #tpu.memory_space<vmem>>) attributes {dimension_semantics = [#tpu.dimension_semantics<parallel>], iteration_bounds = array<i64: 1>, scalar_prefetch = 0 : i64, scratch_operands = 0 : i64, tpu.core_type = #tpu.core_type<tc>, window_params = [{transform_indices = @transform_0, window_bounds = array<i64: 16, 128>}, {pipeline_mode = #tpu.pipeline_mode<synchronous>, transform_indices = @transform_1, window_bounds = array<i64: 128, 128>}, {pipeline_mode = #tpu.pipeline_mode<synchronous>, transform_indices = @transform_2, window_bounds = array<i64: 1, 128>}, {pipeline_mode = #tpu.pipeline_mode<synchronous>, transform_indices = @transform_3, window_bounds = array<i64: 128, 128>}, {pipeline_mode = #tpu.pipeline_mode<synchronous>, transform_indices = @transform_4, window_bounds = array<i64: 1, 128>}, {transform_indices = @transform_5, window_bounds = array<i64: 16, 128>}]} {
    %c0 = arith.constant 0 : index
    %c0_0 = arith.constant 0 : index
    %0 = vector.load %arg1[%c0, %c0_0] : memref<16x128xbf16, #tpu.memory_space<vmem>>, vector<16x128xbf16>
    %c0_1 = arith.constant 0 : index
    %c0_2 = arith.constant 0 : index
    %1 = vector.load %arg2[%c0_1, %c0_2] : memref<128x128xbf16, #tpu.memory_space<vmem>>, vector<128x128xbf16>
    %cst = arith.constant dense<0.000000e+00> : vector<16x128xf32>
    %2 = tpu.matmul %0, %1, %cst {dimension_numbers = #tpu.dot_dimension_numbers<[1], [0], [0], [1], [0, 0, 1, 1], [], []>} : vector<16x128xbf16>, vector<128x128xbf16>, vector<16x128xf32> -> vector<16x128xf32>
    %c0_3 = arith.constant 0 : index
    %c0_4 = arith.constant 0 : index
    %3 = vector.load %arg3[%c0_3, %c0_4] : memref<1x128xf32, #tpu.memory_space<vmem>>, vector<1x128xf32>
    %4 = vector.broadcast %3 : vector<1x128xf32> to vector<16x128xf32>
    %5 = arith.addf %2, %4 : vector<16x128xf32>
    %cst_5 = arith.constant 0.000000e+00 : f32
    %6 = vector.broadcast %cst_5 : f32 to vector<16x128xf32>
    %7 = arith.maximumf %5, %6 : vector<16x128xf32>
    %8 = arith.truncf %7 : vector<16x128xf32> to vector<16x128xbf16>
    %c0_6 = arith.constant 0 : index
    %c0_7 = arith.constant 0 : index
    %9 = vector.load %arg4[%c0_6, %c0_7] : memref<128x128xbf16, #tpu.memory_space<vmem>>, vector<128x128xbf16>
    %cst_8 = arith.constant dense<0.000000e+00> : vector<16x128xf32>
    %10 = tpu.matmul %8, %9, %cst_8 {dimension_numbers = #tpu.dot_dimension_numbers<[1], [0], [0], [1], [0, 0, 1, 1], [], []>} : vector<16x128xbf16>, vector<128x128xbf16>, vector<16x128xf32> -> vector<16x128xf32>
    %c0_9 = arith.constant 0 : index
    %c0_10 = arith.constant 0 : index
    %11 = vector.load %arg5[%c0_9, %c0_10] : memref<1x128xf32, #tpu.memory_space<vmem>>, vector<1x128xf32>
    %12 = vector.broadcast %11 : vector<1x128xf32> to vector<16x128xf32>
    %13 = arith.addf %10, %12 : vector<16x128xf32>
    %14 = arith.truncf %13 : vector<16x128xf32> to vector<16x128xbf16>
    %c0_11 = arith.constant 0 : index
    %c0_12 = arith.constant 0 : index
    %15 = vector.load %arg6[%c0_11, %c0_12] : memref<16x128xbf16, #tpu.memory_space<vmem>>, vector<16x128xbf16>
    tpu.vector_store %arg6[%c0_11, %c0_12], %14 {strides = array<i32>} : memref<16x128xbf16, #tpu.memory_space<vmem>>, vector<16x128xbf16>,
    return
  }
  func.func @transform_0(%arg0: i32) -> (i32, i32) {
    %c0_i32 = arith.constant 0 : i32
    %c0_i32_0 = arith.constant 0 : i32
    return %arg0, %c0_i32 : i32, i32
  }
  func.func @transform_1(%arg0: i32) -> (i32, i32) {
    %c0_i32 = arith.constant 0 : i32
    %c0_i32_0 = arith.constant 0 : i32
    %c0_i32_1 = arith.constant 0 : i32
    return %c0_i32, %c0_i32_0 : i32, i32
  }
  func.func @transform_2(%arg0: i32) -> (i32, i32) {
    %c0_i32 = arith.constant 0 : i32
    %c0_i32_0 = arith.constant 0 : i32
    %c0_i32_1 = arith.constant 0 : i32
    return %c0_i32, %c0_i32_0 : i32, i32
  }
  func.func @transform_3(%arg0: i32) -> (i32, i32) {
    %c0_i32 = arith.constant 0 : i32
    %c0_i32_0 = arith.constant 0 : i32
    %c0_i32_1 = arith.constant 0 : i32
    return %c0_i32, %c0_i32_0 : i32, i32
  }
  func.func @transform_4(%arg0: i32) -> (i32, i32) {
    %c0_i32 = arith.constant 0 : i32
    %c0_i32_0 = arith.constant 0 : i32
    %c0_i32_1 = arith.constant 0 : i32
    return %c0_i32, %c0_i32_0 : i32, i32
  }
  func.func @transform_5(%arg0: i32) -> (i32, i32) {
    %c0_i32 = arith.constant 0 : i32
    %c0_i32_0 = arith.constant 0 : i32
    return %arg0, %c0_i32 : i32, i32
  }
}

</mosaic_0001>

<bundles_post_ra>
// kernel: neural_net2_forward.1
= control target key start
LH: loop header
LB: loop body
LE: loop exit
PB: predicated region body
PF: predicated region fallthrough
CT: control target
= control target key end

     0   :  { %10 = vsyncpa [#allocation3], 0  ;;  %s529_s0 = inlined_call_operand.vmem [shape: bf16[16,128], index: 0, kind: input, shape index: {}]   ;;  %s530_s1 = inlined_call_operand.hbm [shape: bf16[128,128], index: 1, kind: input, shape index: {}]   ;;  %s531_s2 = inlined_call_operand.vmem [shape: f32[1,128], index: 2, kind: input, shape index: {}]   ;;  %s532_s3 = inlined_call_operand.hbm [shape: bf16[128,128], index: 3, kind: input, shape index: {}]   ;;  %s533_s4 = inlined_call_operand.vmem [shape: f32[1,128], index: 4, kind: input, shape index: {}]   ;;  %s534_s5 = inlined_call_operand.vmem [shape: bf16[16,128], index: 5, kind: output, shape index: {}]  }
   0x1   :  { %11 = vsyncpa [#allocation5], 0  ;;  %s457_s18 = smov [#allocation2]   ;;  %s409_s22 = scalar_lea.hbm %s530_s1, 1024 }
   0x2   :  { %s19_s19 = sshll.u32 %s457_s18, 4  ;;  %p410_p0 = scmp.ne.s32.totalorder %s530_s1, %s409_s22  ;;  %s20_s19 = int_to_ptr.vmem [resolvable:$true] %s19_s19 }
   0x3   :  { %p413_p1 = scmp.lt.u32.totalorder %s409_s22, %s530_s1 }
   0x5   :  { %p415_p2 = pnand %p413_p1, %p410_p0 }
   0x7   :  { %418 = shalt.err (!%p415_p2)
}
   0x8   :  { %s419_s27 = scalar_lea.vmem %s20_s19, 1024  ;;  %p424_p4 = scmp.lt.s32.totalorder %s20_s19, %s20_s19 }
   0x9   :  { %p420_p3 = scmp.ne.s32.totalorder %s20_s19, %s419_s27  ;;  %p425_p5 = scmp.lt.s32.totalorder %s419_s27, %s419_s27 }
   0xb   :  { %p426_p6 = por %p425_p5, %p424_p4 }
   0xd   :  { %p427_p7 = pnand %p426_p6, %p420_p3 }
   0xf   :  { %430 = shalt.err (!%p427_p7)
}
  0x10   :  { %s458_s28 = smov 64   ;;  %s459_s29 = smov 4  }
  0x11   :  { %25 = dma.hbm_to_vmem [thread:$0]  %s530_s1, 1024, %s20_s19, [#allocation3], %s458_s28, %s458_s28, %s459_s29  }
  0x12   :  { %s460_s7 = smov [#allocation4]   ;;  %s431_s11 = scalar_lea.hbm %s532_s3, 1024 }
  0x13   :  { %s33_s8 = sshll.u32 %s460_s7, 4  ;;  %p432_p8 = scmp.ne.s32.totalorder %s532_s3, %s431_s11  ;;  %s34_s8 = int_to_ptr.vmem [resolvable:$true] %s33_s8 }
  0x14   :  { %p435_p9 = scmp.lt.u32.totalorder %s431_s11, %s532_s3 }
  0x16   :  { %p437_p10 = pnand %p435_p9, %p432_p8 }
  0x18   :  { %440 = shalt.err (!%p437_p10)
}
  0x19   :  { %s441_s16 = scalar_lea.vmem %s34_s8, 1024  ;;  %p446_p12 = scmp.lt.s32.totalorder %s34_s8, %s34_s8 }
  0x1a   :  { %p442_p11 = scmp.ne.s32.totalorder %s34_s8, %s441_s16  ;;  %p447_p13 = scmp.lt.s32.totalorder %s441_s16, %s441_s16 }
  0x1c   :  { %p448_p0 = por %p447_p13, %p446_p12 }
  0x1e   :  { %p449_p1 = pnand %p448_p0, %p442_p11 }
  0x20   :  { %452 = shalt.err (!%p449_p1)
}
  0x21   :  { %39 = dma.hbm_to_vmem [thread:$0]  %s532_s3, 1024, %s34_s8, [#allocation5], %s458_s28, %s458_s28, %s459_s29  }
  0x22   :  { %453 = dma.done.wait [#allocation3], 1024  }
  0x23   :  { %454 = vsyncadd [#allocation3], 4294966272 }
  0x24   :  { %455 = dma.done.wait [#allocation5], 1024  }
  0x25   :  { %456 = vsyncadd [#allocation5], 4294966272  ;;  %v461_v0 = vmov 0.0   ;;  %vm462_vm0 = vmmov 0   ;;  %v392_v1 = vld [vmem:[#allocation2] sm:$0xff]   ;;  %v393_v2 = vld [vmem:[#allocation2 + $0x8] sm:$0xff]  }
  0x26   :  { %346 = vmatprep.subr.bf16.mxu0 %v461_v0  ;;  %362 = vmatprep.mubr.msk.bf16.mxu0 %vm462_vm0, %v461_v0  ;;  %v394_v3 = vld [vmem:[#allocation2 + $0x10] sm:$0xff]   ;;  %v401_v4 = vld [vmem:[#allocation4] sm:$0xff]   ;;  %v395_v5 = vld [vmem:[#allocation2 + $0x18] sm:$0xff]  }
  0x27   :  { %366 = vmatprep.subr.bf16.mxu1 %v461_v0  ;;  %382 = vmatprep.mubr.msk.bf16.mxu1 %vm462_vm0, %v461_v0  ;;  %v402_v6 = vld [vmem:[#allocation4 + $0x8] sm:$0xff]   ;;  %v396_v7 = vld [vmem:[#allocation2 + $0x20] sm:$0xff]   ;;  %v403_v8 = vld [vmem:[#allocation4 + $0x10] sm:$0xff]  }
  0x28   :  { %347 = vmatpush3.bf16.msra.mxu0 %v392_v1  ;;  %367 = vmatpush3.bf16.msra.mxu1 %v401_v4  ;;  %v397_v9 = vld [vmem:[#allocation2 + $0x28] sm:$0xff]   ;;  %v404_v10 = vld [vmem:[#allocation4 + $0x18] sm:$0xff]   ;;  %v398_v11 = vld [vmem:[#allocation2 + $0x30] sm:$0xff]  }
  0x29   :  { %348 = vmatprep.subr.bf16.mxu0 %v461_v0  ;;  %368 = vmatprep.subr.bf16.mxu1 %v461_v0  ;;  %v405_v12 = vld [vmem:[#allocation4 + $0x20] sm:$0xff]   ;;  %v399_v13 = vld [vmem:[#allocation2 + $0x38] sm:$0xff]   ;;  %v406_v14 = vld [vmem:[#allocation4 + $0x28] sm:$0xff]  }
  0x2a   :  { %v400_v15 = vld [vmem:[%s529_s0] sm:$0xff]   ;;  %v407_v16 = vld [vmem:[#allocation4 + $0x30] sm:$0xff]   ;;  %v408_v17 = vld [vmem:[#allocation4 + $0x38] sm:$0xff]  }
  0x2b   :  { %v300_v18 = vld [vmem:[%s531_s2] ss:$0 sm:$0xff] }
  0x2c   :  { %349 = vmatpush3.bf16.msra.mxu0 %v393_v2  ;;  %369 = vmatpush3.bf16.msra.mxu1 %v402_v6  ;;  %v310_v28 = vld [vmem:[%s533_s4] ss:$0 sm:$0xff] }
  0x2d   :  { %350 = vmatprep.subr.bf16.mxu0 %v461_v0  ;;  %370 = vmatprep.subr.bf16.mxu1 %v461_v0 }
  0x30   :  { %351 = vmatpush3.bf16.msra.mxu0 %v394_v3  ;;  %371 = vmatpush3.bf16.msra.mxu1 %v403_v8 }
  0x31   :  { %352 = vmatprep.subr.bf16.mxu0 %v461_v0  ;;  %372 = vmatprep.subr.bf16.mxu1 %v461_v0 }
  0x34   :  { %353 = vmatpush3.bf16.msra.mxu0 %v395_v5  ;;  %373 = vmatpush3.bf16.msra.mxu1 %v404_v10 }
  0x35   :  { %354 = vmatprep.subr.bf16.mxu0 %v461_v0  ;;  %374 = vmatprep.subr.bf16.mxu1 %v461_v0 }
  0x38   :  { %355 = vmatpush3.bf16.msra.mxu0 %v396_v7  ;;  %375 = vmatpush3.bf16.msra.mxu1 %v405_v12 }
  0x39   :  { %356 = vmatprep.subr.bf16.mxu0 %v461_v0  ;;  %376 = vmatprep.subr.bf16.mxu1 %v461_v0 }
  0x3c   :  { %357 = vmatpush3.bf16.msra.mxu0 %v397_v9  ;;  %377 = vmatpush3.bf16.msra.mxu1 %v406_v14 }
  0x3d   :  { %358 = vmatprep.subr.bf16.mxu0 %v461_v0  ;;  %378 = vmatprep.subr.bf16.mxu1 %v461_v0 }
  0x40   :  { %359 = vmatpush3.bf16.msra.mxu0 %v398_v11  ;;  %379 = vmatpush3.bf16.msra.mxu1 %v407_v16 }
  0x41   :  { %360 = vmatprep.subr.bf16.mxu0 %v461_v0  ;;  %380 = vmatprep.subr.bf16.mxu1 %v461_v0 }
  0x44   :  { %361 = vmatpush3.bf16.msra.mxu0 %v399_v13  ;;  %381 = vmatpush3.bf16.msra.mxu1 %v408_v17 }
  0x47   :  { %363 = vmatmul.mubr.bf16.vlgmr.msra.gmra.mrb[0].mxu0 %v400_v15 }
 0x11a   :  { %v162_v19 = vpop.f32.mrb[0].mxu0 }
 0x11b   :  { %v163_v20 = vadd.f32 %v300_v18, %v162_v19  ;;  %v364_v21 = vpop.f32.mrb[1].mxu0 }
 0x11c   :  { %v165_v22 = vpop.f32.mrb[2].mxu0 }
 0x11d   :  { %v166_v23 = vadd.f32 %v300_v18, %v165_v22  ;;  %v365_v24 = vpop.f32.mrb[3].mxu0  ;;  %v169_v25 = vmax.f32 %v163_v20, 0.0 }
 0x11f   :  { %v170_v26 = vmax.f32 %v166_v23, 0.0 }
 0x121   :  { %v171_v27 = vpack.c.bf16 %v170_v26, %v169_v25 }
 0x123   :  { %383 = vmatmul.mubr.bf16.vlgmr.msra.gmra.mrb[0].mxu1 %v171_v27 }
 0x1f6   :  { %v277_v29 = vpop.f32.mrb[0].mxu1 }
 0x1f7   :  { %v384_v30 = vpop.f32.mrb[1].mxu1  ;;  %v278_v32 = vadd.f32 %v310_v28, %v277_v29 }
 0x1f8   :  { %v280_v31 = vpop.f32.mrb[2].mxu1 }
 0x1f9   :  { %v281_v33 = vadd.f32 %v310_v28, %v280_v31  ;;  %v385_v34 = vpop.f32.mrb[3].mxu1 }
 0x1fb   :  { %v326_v35 = vpack.c.bf16 %v281_v33, %v278_v32 }
 0x1fd   :  { %327 = vst [vmem:[%s534_s5] sm:$0xff] %v326_v35  }
 0x1fe   :  { %298 = vsyncpa [#allocation3], 1 }
 0x1ff   :  { %299 = vsyncpa [#allocation5], 1 }

</bundles_post_ra>
